<compile_context>
chip_gen: v7x
topology: tpu7x:2x2x1
jax: 0.10.0
libtpu: 0.0.40
codegen_flags: <defaults>
</compile_context>

<pallas_src>
import functools

import jax
import jax.numpy as jnp
from jax.experimental import pallas as pl
from jax.experimental.pallas import tpu as pltpu


def _physical_vmem_bytes():
    """Per-core physical VMEM (64 MiB on v7x, 128 MiB on v5e/v6e); conservative fallback."""
    try:
        info = pltpu.get_tpu_info()
        return int(getattr(info, "vmem_capacity_bytes", 64 << 20))
    except Exception:
        return 64 << 20


def _layernorm(x, gamma, beta, eps=1e-5):
    mu = jnp.mean(x, axis=-1, keepdims=True)
    var = jnp.mean(jnp.square(x - mu), axis=-1, keepdims=True)
    return (x - mu) * jax.lax.rsqrt(var + eps) * gamma + beta


def _encoder_block_kernel(x_ref,
                          wqkv_ref, wu_ref, bu_ref,
                          w1_ref, b1_ref, w2_ref, b2_ref,
                          g1_ref, be1_ref, g2_ref, be2_ref,
                          o_ref, *, heads, mask):
    Bb, T, E = x_ref.shape
    s = E // heads

    xb = x_ref[...].reshape(Bb * T, E)              # bf16 activations straight from HBM
    x32 = xb.astype(jnp.float32)                    # f32 copy for the residual path

    # --- fused Q/K/V projection (1/E**0.25 scale folded into Wq/Wk host-side) -------
    # bf16 MXU inputs, f32 accumulation; one full-width downcast for the attention path.
    qkv = jnp.dot(xb, wqkv_ref[...], preferred_element_type=jnp.float32)
    qkv = qkv.astype(jnp.bfloat16)                  # (Bb*T, 3E) bf16
    q = qkv[:, 0 * E:1 * E].reshape(Bb, T, E)
    k = qkv[:, 1 * E:2 * E].reshape(Bb, T, E)
    v = qkv[:, 2 * E:3 * E].reshape(Bb, T, E)

    if mask:
        row = jax.lax.broadcasted_iota(jnp.int32, (T, T), 0)
        col = jax.lax.broadcasted_iota(jnp.int32, (T, T), 1)
        causal = col > row                          # (T, T) bool, built once per grid step

    # --- multi-head attention: sequence-batched einsums per head (static loop); head
    #     outputs stay in registers and are concatenated -> no VMEM scratch roundtrip,
    #     no sub-128-lane partial stores ---------------------------------------------
    head_outs = []
    for hh in range(heads):                         # static, small
        lo = hh * s
        qh = q[:, :, lo:lo + s]                     # (Bb, T, s) bf16
        kh = k[:, :, lo:lo + s]
        vh = v[:, :, lo:lo + s]
        sc = jnp.einsum('btd,bud->btu', qh, kh,
                        preferred_element_type=jnp.float32)    # (Bb, T, T) f32
        if mask:
            sc = jnp.where(causal, jnp.float32(-1e30), sc)
        sc = sc - jnp.max(sc, axis=-1, keepdims=True)
        p = jnp.exp(sc)                             # f32 EUP (portable to v5e)
        p = p * pl.reciprocal(jnp.sum(p, axis=-1, keepdims=True), approx=True)
        head_outs.append(
            jnp.einsum('btu,bud->btd', p.astype(jnp.bfloat16), vh,
                       preferred_element_type=jnp.float32))    # (Bb, T, s) f32

    attn = jnp.concatenate(head_outs, axis=-1).reshape(Bb * T, E)
    attended = jnp.dot(attn.astype(jnp.bfloat16), wu_ref[...],
                       preferred_element_type=jnp.float32) + bu_ref[...]

    # --- residual + LayerNorm 1 (f32) ------------------------------------------------
    x1 = _layernorm(x32 + attended, g1_ref[...], be1_ref[...])

    # --- feed-forward: Linear -> ReLU -> Linear (bf16 MXU inputs, f32 accumulation) --
    h1 = jnp.dot(x1.astype(jnp.bfloat16), w1_ref[...],
                 preferred_element_type=jnp.float32) + b1_ref[...]
    h1 = jnp.maximum(h1, 0.0)
    ff = jnp.dot(h1.astype(jnp.bfloat16), w2_ref[...],
                 preferred_element_type=jnp.float32) + b2_ref[...]

    # --- residual + LayerNorm 2; single lane-dense store of the output tile ----------
    out = _layernorm(x1 + ff, g2_ref[...], be2_ref[...])
    o_ref[...] = out.reshape(Bb, T, E).astype(o_ref.dtype)


def _pick_block_b(B, T, E, H, weight_bytes, phys_vmem):
    """Rows (Bb*T) per grid step: 512-1024 target, capped by the current generation's
    VMEM budget; prefer an even grid length (v7x has 2 TensorCores); require Bb | B."""
    per_row = (2 * E * 2 + 2 * E * 4      # double-buffered x (bf16) / out (f32) tiles
               + 3 * E * (4 + 2)          # qkv f32 + bf16 copy
               + 2 * T * 4                # one head's (T,T) scores + probs (f32)
               + E * (4 + 2)              # concatenated head outputs (f32 + bf16)
               + 3 * E * 4                # attended / x1 / ff (f32)
               + H * 4)                   # FFN hidden (f32)
    budget = int(0.8 * phys_vmem) - weight_bytes - (4 << 20)
    rows_cap = max(T, budget // max(per_row, 1))
    row_target = min(max(512, min(1024, rows_cap)), rows_cap)
    Bb = max(1, min(B, row_target // max(T, 1)))
    while B % Bb:
        Bb -= 1
    if (B // Bb) % 2 and B >= 2:          # prefer an even number of grid steps
        for cand in range(Bb, 0, -1):
            if B % cand == 0 and (B // cand) % 2 == 0:
                Bb = cand
                break
    return Bb


def encoder_block_pallas(x, params, *, heads, mask):
    B, T, E = x.shape
    H = params["w1"].shape[1]
    assert E % heads == 0

    # Host-side weight prep: fuse QKV, fold the 1/E**0.25 attention scale into Wq/Wk,
    # cast all matmul weights to bf16 (f32 accumulation happens on the MXU).
    scale = 1.0 / (E ** 0.25)
    wqkv = jnp.concatenate(
        [params["wq"] * scale, params["wk"] * scale, params["wv"]], axis=1
    ).astype(jnp.bfloat16)                                  # (E, 3E)
    wu = params["wu"].astype(jnp.bfloat16)                  # (E, E)
    w1 = params["w1"].astype(jnp.bfloat16)                  # (E, H)
    w2 = params["w2"].astype(jnp.bfloat16)                  # (H, E)

    # bf16 activations at the kernel boundary (halves x HBM traffic); output stays in
    # x.dtype for accuracy.  TODO(synk): offer a bf16 output path for mem-bound serving.
    xb = x.astype(jnp.bfloat16)

    weight_bytes = wqkv.nbytes + wu.nbytes + w1.nbytes + w2.nbytes
    small_bytes = sum(params[k].nbytes
                      for k in ("bu", "b1", "b2", "g1", "be1", "g2", "be2"))
    phys_vmem = _physical_vmem_bytes()

    Bb = _pick_block_b(B, T, E, H, weight_bytes, phys_vmem)
    grid = (B // Bb,)
    rows = Bb * T

    # VMEM budget: resident single-buffered weights + double-buffered x/out tiles +
    # live intermediates (only ONE head's (T,T) block is live at a time).
    tile_bytes = 2 * rows * E * 2 + 2 * rows * E * 4
    work_bytes = (rows * 3 * E * (4 + 2) + 2 * rows * T * 4
                  + rows * E * (4 + 2) + 3 * rows * E * 4 + rows * H * 4)
    vmem_limit = int(1.3 * (weight_bytes + small_bytes + tile_bytes + work_bytes)) + (2 << 20)
    vmem_limit = min(max(vmem_limit, 8 << 20), int(0.85 * phys_vmem))

    kern = functools.partial(_encoder_block_kernel, heads=heads, mask=mask)

    def wspec(arr):
        # Constant index_map -> single-buffer (double-buffering resident weights wastes VMEM).
        zeros = (0,) * arr.ndim
        return pl.BlockSpec(arr.shape, lambda b, _z=zeros: _z,
                            pipeline_mode=pl.Buffered(1))

    in_specs = [
        pl.BlockSpec((Bb, T, E), lambda b: (b, 0, 0)),      # x: Bb sequences per step
        wspec(wqkv), wspec(wu), wspec(params["bu"]),
        wspec(w1), wspec(params["b1"]), wspec(w2), wspec(params["b2"]),
        wspec(params["g1"]), wspec(params["be1"]),
        wspec(params["g2"]), wspec(params["be2"]),
    ]

    return pl.pallas_call(
        kern,
        out_shape=jax.ShapeDtypeStruct((B, T, E), x.dtype),
        grid=grid,
        in_specs=in_specs,
        out_specs=pl.BlockSpec((Bb, T, E), lambda b: (b, 0, 0)),
        compiler_params=pltpu.CompilerParams(
            dimension_semantics=("parallel",),
            vmem_limit_bytes=vmem_limit,
        ),
    )(xb, wqkv, wu, params["bu"], w1, params["b1"], w2, params["b2"],
      params["g1"], params["be1"], params["g2"], params["be2"])


def encoder_block_ref(x, params, *, heads, mask):
    """Pure-JAX f32 reference mirroring the PyTorch forward exactly."""
    B, T, E = x.shape
    s = E // heads
    scale = E ** 0.25
    q = (x @ params["wq"]).reshape(B, T, heads, s).transpose(0, 2, 1, 3) / scale
    k = (x @ params["wk"]).reshape(B, T, heads, s).transpose(0, 2, 1, 3) / scale
    v = (x @ params["wv"]).reshape(B, T, heads, s).transpose(0, 2, 1, 3)
    dot = jnp.einsum("bhts,bhus->bhtu", q, k)
    if mask:
        row = jnp.arange(T)[:, None]
        col = jnp.arange(T)[None, :]
        dot = dot + jnp.where(col > row, -jnp.inf, 0.0)
    p = jax.nn.softmax(dot, axis=-1)
    out = jnp.einsum("bhtu,bhus->bhts", p, v).transpose(0, 2, 1, 3).reshape(B, T, E)
    attended = out @ params["wu"] + params["bu"][0]

    def ln(y, g, b):
        mu = y.mean(-1, keepdims=True)
        var = ((y - mu) ** 2).mean(-1, keepdims=True)
        return (y - mu) / jnp.sqrt(var + 1e-5) * g[0] + b[0]

    x1 = ln(x + attended, params["g1"], params["be1"])
    ff = jnp.maximum(x1 @ params["w1"] + params["b1"][0], 0.0) @ params["w2"] + params["b2"][0]
    return ln(x1 + ff, params["g2"], params["be2"])


if __name__ == "__main__":
    B, T, EMB, HEADS, HIDDEN = 2, 8, 32, 4, 4
    H = HIDDEN * EMB

    key = jax.random.PRNGKey(0)
    keys = jax.random.split(key, 10)

    def init(k, shape, scale=0.1):
        return (scale * jax.random.normal(k, shape)).astype(jnp.float32)

    params = {
        "wq": init(keys[0], (EMB, EMB)),
        "wk": init(keys[1], (EMB, EMB)),
        "wv": init(keys[2], (EMB, EMB)),
        "wu": init(keys[3], (EMB, EMB)),
        "bu": init(keys[4], (1, EMB)),
        "w1": init(keys[5], (EMB, H)),
        "b1": init(keys[6], (1, H)),
        "w2": init(keys[7], (H, EMB)),
        "b2": init(keys[8], (1, EMB)),
        "g1": jnp.ones((1, EMB), jnp.float32),   # nn.LayerNorm default init
        "be1": jnp.zeros((1, EMB), jnp.float32),
        "g2": jnp.ones((1, EMB), jnp.float32),
        "be2": jnp.zeros((1, EMB), jnp.float32),
    }

    x = jax.random.normal(keys[9], (B, T, EMB), dtype=jnp.float32)

    for MASK in (False, True):
        out = encoder_block_pallas(x, params, heads=HEADS, mask=MASK)
        out = jax.block_until_ready(out)
        ref = encoder_block_ref(x, params, heads=HEADS, mask=MASK)
        assert out.shape == (B, T, EMB)
        # bf16 activations/weights on the MXU + approx reciprocal vs a pure-f32 reference.
        assert jnp.allclose(out, ref, atol=5e-2, rtol=5e-2), f"mismatch vs reference (mask={MASK})"

    print("KERNEL_OK")
</pallas_src>

<mosaic_0001>
module attributes {stable_mosaic.version = 11 : i64} {
  func.func @_encoder_block_kernel(%arg0: i32, %arg1: memref<1x8x32xbf16, #tpu.memory_space<vmem>>, %arg2: memref<32x96xbf16, #tpu.memory_space<vmem>>, %arg3: memref<32x32xbf16, #tpu.memory_space<vmem>>, %arg4: memref<1x32xf32, #tpu.memory_space<vmem>>, %arg5: memref<32x128xbf16, #tpu.memory_space<vmem>>, %arg6: memref<1x128xf32, #tpu.memory_space<vmem>>, %arg7: memref<128x32xbf16, #tpu.memory_space<vmem>>, %arg8: memref<1x32xf32, #tpu.memory_space<vmem>>, %arg9: memref<1x32xf32, #tpu.memory_space<vmem>>, %arg10: memref<1x32xf32, #tpu.memory_space<vmem>>, %arg11: memref<1x32xf32, #tpu.memory_space<vmem>>, %arg12: memref<1x32xf32, #tpu.memory_space<vmem>>, %arg13: memref<1x8x32xf32, #tpu.memory_space<vmem>>) attributes {dimension_semantics = [#tpu.dimension_semantics<parallel>], iteration_bounds = array<i64: 2>, scalar_prefetch = 0 : i64, scratch_operands = 0 : i64, tpu.core_type = #tpu.core_type<tc>, window_params = [{transform_indices = @transform_0, window_bounds = array<i64: 1, 8, 32>}, {pipeline_mode = #tpu.pipeline_mode<synchronous>, transform_indices = @transform_1, window_bounds = array<i64: 32, 96>}, {pipeline_mode = #tpu.pipeline_mode<synchronous>, transform_indices = @transform_2, window_bounds = array<i64: 32, 32>}, {pipeline_mode = #tpu.pipeline_mode<synchronous>, transform_indices = @transform_3, window_bounds = array<i64: 1, 32>}, {pipeline_mode = #tpu.pipeline_mode<synchronous>, transform_indices = @transform_4, window_bounds = array<i64: 32, 128>}, {pipeline_mode = #tpu.pipeline_mode<synchronous>, transform_indices = @transform_5, window_bounds = array<i64: 1, 128>}, {pipeline_mode = #tpu.pipeline_mode<synchronous>, transform_indices = @transform_6, window_bounds = array<i64: 128, 32>}, {pipeline_mode = #tpu.pipeline_mode<synchronous>, transform_indices = @transform_7, window_bounds = array<i64: 1, 32>}, {pipeline_mode = #tpu.pipeline_mode<synchronous>, transform_indices = @transform_8, window_bounds = array<i64: 1, 32>}, {pipeline_mode = #tpu.pipeline_mode<synchronous>, transform_indices = @transform_9, window_bounds = array<i64: 1, 32>}, {pipeline_mode = #tpu.pipeline_mode<synchronous>, transform_indices = @transform_10, window_bounds = array<i64: 1, 32>}, {pipeline_mode = #tpu.pipeline_mode<synchronous>, transform_indices = @transform_11, window_bounds = array<i64: 1, 32>}, {transform_indices = @transform_12, window_bounds = array<i64: 1, 8, 32>}]} {
    %c0 = arith.constant 0 : index
    %c0_0 = arith.constant 0 : index
    %c0_1 = arith.constant 0 : index
    %0 = vector.load %arg1[%c0, %c0_0, %c0_1] : memref<1x8x32xbf16, #tpu.memory_space<vmem>>, vector<1x8x32xbf16>
    %1 = vector.shape_cast %0 : vector<1x8x32xbf16> to vector<8x32xbf16>
    %2 = arith.extf %1 : vector<8x32xbf16> to vector<8x32xf32>
    %c0_2 = arith.constant 0 : index
    %c0_3 = arith.constant 0 : index
    %3 = vector.load %arg2[%c0_2, %c0_3] : memref<32x96xbf16, #tpu.memory_space<vmem>>, vector<32x96xbf16>
    %cst = arith.constant dense<0.000000e+00> : vector<8x96xf32>
    %4 = tpu.matmul %1, %3, %cst {dimension_numbers = #tpu.dot_dimension_numbers<[1], [0], [0], [1], [0, 0, 1, 1], [], []>} : vector<8x32xbf16>, vector<32x96xbf16>, vector<8x96xf32> -> vector<8x96xf32>
    %5 = arith.truncf %4 : vector<8x96xf32> to vector<8x96xbf16>
    %6 = vector.extract_strided_slice %5 {offsets = [0, 0], sizes = [8, 32], strides = [1, 1]} : vector<8x96xbf16> to vector<8x32xbf16>
    %7 = vector.shape_cast %6 : vector<8x32xbf16> to vector<1x8x32xbf16>
    %8 = vector.extract_strided_slice %5 {offsets = [0, 32], sizes = [8, 32], strides = [1, 1]} : vector<8x96xbf16> to vector<8x32xbf16>
    %9 = vector.shape_cast %8 : vector<8x32xbf16> to vector<1x8x32xbf16>
    %10 = vector.extract_strided_slice %5 {offsets = [0, 64], sizes = [8, 32], strides = [1, 1]} : vector<8x96xbf16> to vector<8x32xbf16>
    %11 = vector.shape_cast %10 : vector<8x32xbf16> to vector<1x8x32xbf16>
    %12 = vector.extract_strided_slice %7 {offsets = [0, 0, 0], sizes = [1, 8, 8], strides = [1, 1, 1]} : vector<1x8x32xbf16> to vector<1x8x8xbf16>
    %13 = vector.extract_strided_slice %9 {offsets = [0, 0, 0], sizes = [1, 8, 8], strides = [1, 1, 1]} : vector<1x8x32xbf16> to vector<1x8x8xbf16>
    %14 = vector.extract_strided_slice %11 {offsets = [0, 0, 0], sizes = [1, 8, 8], strides = [1, 1, 1]} : vector<1x8x32xbf16> to vector<1x8x8xbf16>
    "tpu.trace_start"() <{level = 10 : i32, message = "btd,bud->btu"}> : () -> ()
    %cst_4 = arith.constant dense<0.000000e+00> : vector<1x8x8xf32>
    %15 = tpu.matmul %12, %13, %cst_4 {dimension_numbers = #tpu.dot_dimension_numbers<[2], [2], [1], [1], [0, 0, 0, 1, 1, 1], [0], [0]>} : vector<1x8x8xbf16>, vector<1x8x8xbf16>, vector<1x8x8xf32> -> vector<1x8x8xf32>
    "tpu.trace_stop"() : () -> ()
    %cst_5 = arith.constant dense<0xFF800000> : vector<1x8xf32>
    %16 = vector.multi_reduction <maximumf>, %15, %cst_5 [2] : vector<1x8x8xf32> to vector<1x8xf32>
    %17 = vector.shape_cast %16 : vector<1x8xf32> to vector<1x8x1xf32>
    %18 = vector.broadcast %17 : vector<1x8x1xf32> to vector<1x8x8xf32>
    %19 = arith.subf %15, %18 : vector<1x8x8xf32>
    %20 = math.exp %19 : vector<1x8x8xf32>
    %cst_6 = arith.constant dense<0.000000e+00> : vector<1x8xf32>
    %21 = vector.multi_reduction <add>, %20, %cst_6 [2] : vector<1x8x8xf32> to vector<1x8xf32>
    %22 = vector.shape_cast %21 : vector<1x8xf32> to vector<1x8x1xf32>
    %23 = tpu.reciprocal %22 {approx = true} : vector<1x8x1xf32> -> vector<1x8x1xf32>
    %24 = vector.broadcast %23 : vector<1x8x1xf32> to vector<1x8x8xf32>
    %25 = arith.mulf %20, %24 : vector<1x8x8xf32>
    %26 = arith.truncf %25 : vector<1x8x8xf32> to vector<1x8x8xbf16>
    "tpu.trace_start"() <{level = 10 : i32, message = "btu,bud->btd"}> : () -> ()
    %cst_7 = arith.constant dense<0.000000e+00> : vector<1x8x8xf32>
    %27 = tpu.matmul %26, %14, %cst_7 {dimension_numbers = #tpu.dot_dimension_numbers<[2], [1], [1], [2], [0, 0, 0, 1, 1, 2], [0], [0]>} : vector<1x8x8xbf16>, vector<1x8x8xbf16>, vector<1x8x8xf32> -> vector<1x8x8xf32>
    "tpu.trace_stop"() : () -> ()
    %28 = vector.extract_strided_slice %7 {offsets = [0, 0, 8], sizes = [1, 8, 8], strides = [1, 1, 1]} : vector<1x8x32xbf16> to vector<1x8x8xbf16>
    %29 = vector.extract_strided_slice %9 {offsets = [0, 0, 8], sizes = [1, 8, 8], strides = [1, 1, 1]} : vector<1x8x32xbf16> to vector<1x8x8xbf16>
    %30 = vector.extract_strided_slice %11 {offsets = [0, 0, 8], sizes = [1, 8, 8], strides = [1, 1, 1]} : vector<1x8x32xbf16> to vector<1x8x8xbf16>
    "tpu.trace_start"() <{level = 10 : i32, message = "btd,bud->btu"}> : () -> ()
    %cst_8 = arith.constant dense<0.000000e+00> : vector<1x8x8xf32>
    %31 = tpu.matmul %28, %29, %cst_8 {dimension_numbers = #tpu.dot_dimension_numbers<[2], [2], [1], [1], [0, 0, 0, 1, 1, 1], [0], [0]>} : vector<1x8x8xbf16>, vector<1x8x8xbf16>, vector<1x8x8xf32> -> vector<1x8x8xf32>
    "tpu.trace_stop"() : () -> ()
    %cst_9 = arith.constant dense<0xFF800000> : vector<1x8xf32>
    %32 = vector.multi_reduction <maximumf>, %31, %cst_9 [2] : vector<1x8x8xf32> to vector<1x8xf32>
    %33 = vector.shape_cast %32 : vector<1x8xf32> to vector<1x8x1xf32>
    %34 = vector.broadcast %33 : vector<1x8x1xf32> to vector<1x8x8xf32>
    %35 = arith.subf %31, %34 : vector<1x8x8xf32>
    %36 = math.exp %35 : vector<1x8x8xf32>
    %cst_10 = arith.constant dense<0.000000e+00> : vector<1x8xf32>
    %37 = vector.multi_reduction <add>, %36, %cst_10 [2] : vector<1x8x8xf32> to vector<1x8xf32>
    %38 = vector.shape_cast %37 : vector<1x8xf32> to vector<1x8x1xf32>
    %39 = tpu.reciprocal %38 {approx = true} : vector<1x8x1xf32> -> vector<1x8x1xf32>
    %40 = vector.broadcast %39 : vector<1x8x1xf32> to vector<1x8x8xf32>
    %41 = arith.mulf %36, %40 : vector<1x8x8xf32>
    %42 = arith.truncf %41 : vector<1x8x8xf32> to vector<1x8x8xbf16>
    "tpu.trace_start"() <{level = 10 : i32, message = "btu,bud->btd"}> : () -> ()
    %cst_11 = arith.constant dense<0.000000e+00> : vector<1x8x8xf32>
    %43 = tpu.matmul %42, %30, %cst_11 {dimension_numbers = #tpu.dot_dimension_numbers<[2], [1], [1], [2], [0, 0, 0, 1, 1, 2], [0], [0]>} : vector<1x8x8xbf16>, vector<1x8x8xbf16>, vector<1x8x8xf32> -> vector<1x8x8xf32>
    "tpu.trace_stop"() : () -> ()
    %44 = vector.extract_strided_slice %7 {offsets = [0, 0, 16], sizes = [1, 8, 8], strides = [1, 1, 1]} : vector<1x8x32xbf16> to vector<1x8x8xbf16>
    %45 = vector.extract_strided_slice %9 {offsets = [0, 0, 16], sizes = [1, 8, 8], strides = [1, 1, 1]} : vector<1x8x32xbf16> to vector<1x8x8xbf16>
    %46 = vector.extract_strided_slice %11 {offsets = [0, 0, 16], sizes = [1, 8, 8], strides = [1, 1, 1]} : vector<1x8x32xbf16> to vector<1x8x8xbf16>
    "tpu.trace_start"() <{level = 10 : i32, message = "btd,bud->btu"}> : () -> ()
    %cst_12 = arith.constant dense<0.000000e+00> : vector<1x8x8xf32>
    %47 = tpu.matmul %44, %45, %cst_12 {dimension_numbers = #tpu.dot_dimension_numbers<[2], [2], [1], [1], [0, 0, 0, 1, 1, 1], [0], [0]>} : vector<1x8x8xbf16>, vector<1x8x8xbf16>, vector<1x8x8xf32> -> vector<1x8x8xf32>
    "tpu.trace_stop"() : () -> ()
    %cst_13 = arith.constant dense<0xFF800000> : vector<1x8xf32>
    %48 = vector.multi_reduction <maximumf>, %47, %cst_13 [2] : vector<1x8x8xf32> to vector<1x8xf32>
    %49 = vector.shape_cast %48 : vector<1x8xf32> to vector<1x8x1xf32>
    %50 = vector.broadcast %49 : vector<1x8x1xf32> to vector<1x8x8xf32>
    %51 = arith.subf %47, %50 : vector<1x8x8xf32>
    %52 = math.exp %51 : vector<1x8x8xf32>
    %cst_14 = arith.constant dense<0.000000e+00> : vector<1x8xf32>
    %53 = vector.multi_reduction <add>, %52, %cst_14 [2] : vector<1x8x8xf32> to vector<1x8xf32>
    %54 = vector.shape_cast %53 : vector<1x8xf32> to vector<1x8x1xf32>
    %55 = tpu.reciprocal %54 {approx = true} : vector<1x8x1xf32> -> vector<1x8x1xf32>
    %56 = vector.broadcast %55 : vector<1x8x1xf32> to vector<1x8x8xf32>
    %57 = arith.mulf %52, %56 : vector<1x8x8xf32>
    %58 = arith.truncf %57 : vector<1x8x8xf32> to vector<1x8x8xbf16>
    "tpu.trace_start"() <{level = 10 : i32, message = "btu,bud->btd"}> : () -> ()
    %cst_15 = arith.constant dense<0.000000e+00> : vector<1x8x8xf32>
    %59 = tpu.matmul %58, %46, %cst_15 {dimension_numbers = #tpu.dot_dimension_numbers<[2], [1], [1], [2], [0, 0, 0, 1, 1, 2], [0], [0]>} : vector<1x8x8xbf16>, vector<1x8x8xbf16>, vector<1x8x8xf32> -> vector<1x8x8xf32>
    "tpu.trace_stop"() : () -> ()
    %60 = vector.extract_strided_slice %7 {offsets = [0, 0, 24], sizes = [1, 8, 8], strides = [1, 1, 1]} : vector<1x8x32xbf16> to vector<1x8x8xbf16>
    %61 = vector.extract_strided_slice %9 {offsets = [0, 0, 24], sizes = [1, 8, 8], strides = [1, 1, 1]} : vector<1x8x32xbf16> to vector<1x8x8xbf16>
    %62 = vector.extract_strided_slice %11 {offsets = [0, 0, 24], sizes = [1, 8, 8], strides = [1, 1, 1]} : vector<1x8x32xbf16> to vector<1x8x8xbf16>
    "tpu.trace_start"() <{level = 10 : i32, message = "btd,bud->btu"}> : () -> ()
    %cst_16 = arith.constant dense<0.000000e+00> : vector<1x8x8xf32>
    %63 = tpu.matmul %60, %61, %cst_16 {dimension_numbers = #tpu.dot_dimension_numbers<[2], [2], [1], [1], [0, 0, 0, 1, 1, 1], [0], [0]>} : vector<1x8x8xbf16>, vector<1x8x8xbf16>, vector<1x8x8xf32> -> vector<1x8x8xf32>
    "tpu.trace_stop"() : () -> ()
    %cst_17 = arith.constant dense<0xFF800000> : vector<1x8xf32>
    %64 = vector.multi_reduction <maximumf>, %63, %cst_17 [2] : vector<1x8x8xf32> to vector<1x8xf32>
    %65 = vector.shape_cast %64 : vector<1x8xf32> to vector<1x8x1xf32>
    %66 = vector.broadcast %65 : vector<1x8x1xf32> to vector<1x8x8xf32>
    %67 = arith.subf %63, %66 : vector<1x8x8xf32>
    %68 = math.exp %67 : vector<1x8x8xf32>
    %cst_18 = arith.constant dense<0.000000e+00> : vector<1x8xf32>
    %69 = vector.multi_reduction <add>, %68, %cst_18 [2] : vector<1x8x8xf32> to vector<1x8xf32>
    %70 = vector.shape_cast %69 : vector<1x8xf32> to vector<1x8x1xf32>
    %71 = tpu.reciprocal %70 {approx = true} : vector<1x8x1xf32> -> vector<1x8x1xf32>
    %72 = vector.broadcast %71 : vector<1x8x1xf32> to vector<1x8x8xf32>
    %73 = arith.mulf %68, %72 : vector<1x8x8xf32>
    %74 = arith.truncf %73 : vector<1x8x8xf32> to vector<1x8x8xbf16>
    "tpu.trace_start"() <{level = 10 : i32, message = "btu,bud->btd"}> : () -> ()
    %cst_19 = arith.constant dense<0.000000e+00> : vector<1x8x8xf32>
    %75 = tpu.matmul %74, %62, %cst_19 {dimension_numbers = #tpu.dot_dimension_numbers<[2], [1], [1], [2], [0, 0, 0, 1, 1, 2], [0], [0]>} : vector<1x8x8xbf16>, vector<1x8x8xbf16>, vector<1x8x8xf32> -> vector<1x8x8xf32>
    "tpu.trace_stop"() : () -> ()
    %76 = tpu.concatenate %27, %43, %59, %75 in 2 : vector<1x8x8xf32>, vector<1x8x8xf32>, vector<1x8x8xf32>, vector<1x8x8xf32> -> vector<1x8x32xf32>
    %77 = vector.shape_cast %76 : vector<1x8x32xf32> to vector<8x32xf32>
    %78 = arith.truncf %77 : vector<8x32xf32> to vector<8x32xbf16>
    %c0_20 = arith.constant 0 : index
    %c0_21 = arith.constant 0 : index
    %79 = vector.load %arg3[%c0_20, %c0_21] : memref<32x32xbf16, #tpu.memory_space<vmem>>, vector<32x32xbf16>
    %cst_22 = arith.constant dense<0.000000e+00> : vector<8x32xf32>
    %80 = tpu.matmul %78, %79, %cst_22 {dimension_numbers = #tpu.dot_dimension_numbers<[1], [0], [0], [1], [0, 0, 1, 1], [], []>} : vector<8x32xbf16>, vector<32x32xbf16>, vector<8x32xf32> -> vector<8x32xf32>
    %c0_23 = arith.constant 0 : index
    %c0_24 = arith.constant 0 : index
    %81 = vector.load %arg4[%c0_23, %c0_24] : memref<1x32xf32, #tpu.memory_space<vmem>>, vector<1x32xf32>
    %82 = vector.broadcast %81 : vector<1x32xf32> to vector<8x32xf32>
    %83 = arith.addf %80, %82 : vector<8x32xf32>
    %84 = arith.addf %2, %83 : vector<8x32xf32>
    %c0_25 = arith.constant 0 : index
    %c0_26 = arith.constant 0 : index
    %85 = vector.load %arg9[%c0_25, %c0_26] : memref<1x32xf32, #tpu.memory_space<vmem>>, vector<1x32xf32>
    %c0_27 = arith.constant 0 : index
    %c0_28 = arith.constant 0 : index
    %86 = vector.load %arg10[%c0_27, %c0_28] : memref<1x32xf32, #tpu.memory_space<vmem>>, vector<1x32xf32>
    %cst_29 = arith.constant dense<0.000000e+00> : vector<8xf32>
    %87 = vector.multi_reduction <add>, %84, %cst_29 [1] : vector<8x32xf32> to vector<8xf32>
    %88 = vector.shape_cast %87 : vector<8xf32> to vector<8x1xf32>
    %cst_30 = arith.constant 3.200000e+01 : f32
    %89 = vector.broadcast %cst_30 : f32 to vector<8x1xf32>
    %90 = arith.divf %88, %89 : vector<8x1xf32>
    %91 = vector.broadcast %90 : vector<8x1xf32> to vector<8x32xf32>
    %92 = arith.subf %84, %91 : vector<8x32xf32>
    %93 = arith.mulf %92, %92 : vector<8x32xf32>
    %cst_31 = arith.constant dense<0.000000e+00> : vector<8xf32>
    %94 = vector.multi_reduction <add>, %93, %cst_31 [1] : vector<8x32xf32> to vector<8xf32>
    %95 = vector.shape_cast %94 : vector<8xf32> to vector<8x1xf32>
    %cst_32 = arith.constant 3.200000e+01 : f32
    %96 = vector.broadcast %cst_32 : f32 to vector<8x1xf32>
    %97 = arith.divf %95, %96 : vector<8x1xf32>
    %98 = vector.broadcast %90 : vector<8x1xf32> to vector<8x32xf32>
    %99 = arith.subf %84, %98 : vector<8x32xf32>
    %cst_33 = arith.constant 9.99999974E-6 : f32
    %100 = vector.broadcast %cst_33 : f32 to vector<8x1xf32>
    %101 = arith.addf %97, %100 : vector<8x1xf32>
    %102 = math.rsqrt %101 : vector<8x1xf32>
    %103 = vector.broadcast %102 : vector<8x1xf32> to vector<8x32xf32>
    %104 = arith.mulf %99, %103 : vector<8x32xf32>
    %105 = vector.broadcast %85 : vector<1x32xf32> to vector<8x32xf32>
    %106 = arith.mulf %104, %105 : vector<8x32xf32>
    %107 = vector.broadcast %86 : vector<1x32xf32> to vector<8x32xf32>
    %108 = arith.addf %106, %107 : vector<8x32xf32>
    %109 = arith.truncf %108 : vector<8x32xf32> to vector<8x32xbf16>
    %c0_34 = arith.constant 0 : index
    %c0_35 = arith.constant 0 : index
    %110 = vector.load %arg5[%c0_34, %c0_35] : memref<32x128xbf16, #tpu.memory_space<vmem>>, vector<32x128xbf16>
    %cst_36 = arith.constant dense<0.000000e+00> : vector<8x128xf32>
    %111 = tpu.matmul %109, %110, %cst_36 {dimension_numbers = #tpu.dot_dimension_numbers<[1], [0], [0], [1], [0, 0, 1, 1], [], []>} : vector<8x32xbf16>, vector<32x128xbf16>, vector<8x128xf32> -> vector<8x128xf32>
    %c0_37 = arith.constant 0 : index
    %c0_38 = arith.constant 0 : index
    %112 = vector.load %arg6[%c0_37, %c0_38] : memref<1x128xf32, #tpu.memory_space<vmem>>, vector<1x128xf32>
    %113 = vector.broadcast %112 : vector<1x128xf32> to vector<8x128xf32>
    %114 = arith.addf %111, %113 : vector<8x128xf32>
    %cst_39 = arith.constant 0.000000e+00 : f32
    %115 = vector.broadcast %cst_39 : f32 to vector<8x128xf32>
    %116 = arith.maximumf %114, %115 : vector<8x128xf32>
    %117 = arith.truncf %116 : vector<8x128xf32> to vector<8x128xbf16>
    %c0_40 = arith.constant 0 : index
    %c0_41 = arith.constant 0 : index
    %118 = vector.load %arg7[%c0_40, %c0_41] : memref<128x32xbf16, #tpu.memory_space<vmem>>, vector<128x32xbf16>
    %cst_42 = arith.constant dense<0.000000e+00> : vector<8x32xf32>
    %119 = tpu.matmul %117, %118, %cst_42 {dimension_numbers = #tpu.dot_dimension_numbers<[1], [0], [0], [1], [0, 0, 1, 1], [], []>} : vector<8x128xbf16>, vector<128x32xbf16>, vector<8x32xf32> -> vector<8x32xf32>
    %c0_43 = arith.constant 0 : index
    %c0_44 = arith.constant 0 : index
    %120 = vector.load %arg8[%c0_43, %c0_44] : memref<1x32xf32, #tpu.memory_space<vmem>>, vector<1x32xf32>
    %121 = vector.broadcast %120 : vector<1x32xf32> to vector<8x32xf32>
    %122 = arith.addf %119, %121 : vector<8x32xf32>
    %123 = arith.addf %108, %122 : vector<8x32xf32>
    %c0_45 = arith.constant 0 : index
    %c0_46 = arith.constant 0 : index
    %124 = vector.load %arg11[%c0_45, %c0_46] : memref<1x32xf32, #tpu.memory_space<vmem>>, vector<1x32xf32>
    %c0_47 = arith.constant 0 : index
    %c0_48 = arith.constant 0 : index
    %125 = vector.load %arg12[%c0_47, %c0_48] : memref<1x32xf32, #tpu.memory_space<vmem>>, vector<1x32xf32>
    %cst_49 = arith.constant dense<0.000000e+00> : vector<8xf32>
    %126 = vector.multi_reduction <add>, %123, %cst_49 [1] : vector<8x32xf32> to vector<8xf32>
    %127 = vector.shape_cast %126 : vector<8xf32> to vector<8x1xf32>
    %cst_50 = arith.constant 3.200000e+01 : f32
    %128 = vector.broadcast %cst_50 : f32 to vector<8x1xf32>
    %129 = arith.divf %127, %128 : vector<8x1xf32>
    %130 = vector.broadcast %129 : vector<8x1xf32> to vector<8x32xf32>
    %131 = arith.subf %123, %130 : vector<8x32xf32>
    %132 = arith.mulf %131, %131 : vector<8x32xf32>
    %cst_51 = arith.constant dense<0.000000e+00> : vector<8xf32>
    %133 = vector.multi_reduction <add>, %132, %cst_51 [1] : vector<8x32xf32> to vector<8xf32>
    %134 = vector.shape_cast %133 : vector<8xf32> to vector<8x1xf32>
    %cst_52 = arith.constant 3.200000e+01 : f32
    %135 = vector.broadcast %cst_52 : f32 to vector<8x1xf32>
    %136 = arith.divf %134, %135 : vector<8x1xf32>
    %137 = vector.broadcast %129 : vector<8x1xf32> to vector<8x32xf32>
    %138 = arith.subf %123, %137 : vector<8x32xf32>
    %cst_53 = arith.constant 9.99999974E-6 : f32
    %139 = vector.broadcast %cst_53 : f32 to vector<8x1xf32>
    %140 = arith.addf %136, %139 : vector<8x1xf32>
    %141 = math.rsqrt %140 : vector<8x1xf32>
    %142 = vector.broadcast %141 : vector<8x1xf32> to vector<8x32xf32>
    %143 = arith.mulf %138, %142 : vector<8x32xf32>
    %144 = vector.broadcast %124 : vector<1x32xf32> to vector<8x32xf32>
    %145 = arith.mulf %143, %144 : vector<8x32xf32>
    %146 = vector.broadcast %125 : vector<1x32xf32> to vector<8x32xf32>
    %147 = arith.addf %145, %146 : vector<8x32xf32>
    %148 = vector.shape_cast %147 : vector<8x32xf32> to vector<1x8x32xf32>
    %c0_54 = arith.constant 0 : index
    %c0_55 = arith.constant 0 : index
    %c0_56 = arith.constant 0 : index
    %149 = vector.load %arg13[%c0_54, %c0_55, %c0_56] : memref<1x8x32xf32, #tpu.memory_space<vmem>>, vector<1x8x32xf32>
    tpu.vector_store %arg13[%c0_54, %c0_55, %c0_56], %148 {strides = array<i32>} : memref<1x8x32xf32, #tpu.memory_space<vmem>>, vector<1x8x32xf32>,
    return
  }
  func.func @transform_0(%arg0: i32) -> (i32, i32, i32) {
    %c0_i32 = arith.constant 0 : i32
    %c0_i32_0 = arith.constant 0 : i32
    %c0_i32_1 = arith.constant 0 : i32
    return %arg0, %c0_i32, %c0_i32_0 : i32, i32, i32
  }
  func.func @transform_1(%arg0: i32) -> (i32, i32) {
    %c0_i32 = arith.constant 0 : i32
    %c0_i32_0 = arith.constant 0 : i32
    %c0_i32_1 = arith.constant 0 : i32
    return %c0_i32, %c0_i32_0 : i32, i32
  }
  func.func @transform_2(%arg0: i32) -> (i32, i32) {
    %c0_i32 = arith.constant 0 : i32
    %c0_i32_0 = arith.constant 0 : i32
    %c0_i32_1 = arith.constant 0 : i32
    return %c0_i32, %c0_i32_0 : i32, i32
  }
  func.func @transform_3(%arg0: i32) -> (i32, i32) {
    %c0_i32 = arith.constant 0 : i32
    %c0_i32_0 = arith.constant 0 : i32
    %c0_i32_1 = arith.constant 0 : i32
    return %c0_i32, %c0_i32_0 : i32, i32
  }
  func.func @transform_4(%arg0: i32) -> (i32, i32) {
    %c0_i32 = arith.constant 0 : i32
    %c0_i32_0 = arith.constant 0 : i32
    %c0_i32_1 = arith.constant 0 : i32
    return %c0_i32, %c0_i32_0 : i32, i32
  }
  func.func @transform_5(%arg0: i32) -> (i32, i32) {
    %c0_i32 = arith.constant 0 : i32
    %c0_i32_0 = arith.constant 0 : i32
    %c0_i32_1 = arith.constant 0 : i32
    return %c0_i32, %c0_i32_0 : i32, i32
  }
  func.func @transform_6(%arg0: i32) -> (i32, i32) {
    %c0_i32 = arith.constant 0 : i32
    %c0_i32_0 = arith.constant 0 : i32
    %c0_i32_1 = arith.constant 0 : i32
    return %c0_i32, %c0_i32_0 : i32, i32
  }
  func.func @transform_7(%arg0: i32) -> (i32, i32) {
    %c0_i32 = arith.constant 0 : i32
    %c0_i32_0 = arith.constant 0 : i32
    %c0_i32_1 = arith.constant 0 : i32
    return %c0_i32, %c0_i32_0 : i32, i32
  }
  func.func @transform_8(%arg0: i32) -> (i32, i32) {
    %c0_i32 = arith.constant 0 : i32
    %c0_i32_0 = arith.constant 0 : i32
    %c0_i32_1 = arith.constant 0 : i32
    return %c0_i32, %c0_i32_0 : i32, i32
  }
  func.func @transform_9(%arg0: i32) -> (i32, i32) {
    %c0_i32 = arith.constant 0 : i32
    %c0_i32_0 = arith.constant 0 : i32
    %c0_i32_1 = arith.constant 0 : i32
    return %c0_i32, %c0_i32_0 : i32, i32
  }
  func.func @transform_10(%arg0: i32) -> (i32, i32) {
    %c0_i32 = arith.constant 0 : i32
    %c0_i32_0 = arith.constant 0 : i32
    %c0_i32_1 = arith.constant 0 : i32
    return %c0_i32, %c0_i32_0 : i32, i32
  }
  func.func @transform_11(%arg0: i32) -> (i32, i32) {
    %c0_i32 = arith.constant 0 : i32
    %c0_i32_0 = arith.constant 0 : i32
    %c0_i32_1 = arith.constant 0 : i32
    return %c0_i32, %c0_i32_0 : i32, i32
  }
  func.func @transform_12(%arg0: i32) -> (i32, i32, i32) {
    %c0_i32 = arith.constant 0 : i32
    %c0_i32_0 = arith.constant 0 : i32
    %c0_i32_1 = arith.constant 0 : i32
    return %arg0, %c0_i32, %c0_i32_0 : i32, i32, i32
  }
}

</mosaic_0001>

<bundles_post_ra>
// kernel: tpu_custom_call.1
= control target key start
LH: loop header
LB: loop body
LE: loop exit
PB: predicated region body
PF: predicated region fallthrough
CT: control target
= control target key end

     0   :  { %s1976_s0 = inlined_call_operand.vmem [shape: bf16[2,8,32], index: 0, kind: input, shape index: {}]   ;;  %s1977_s1 = inlined_call_operand.vmem [shape: bf16[32,96], index: 1, kind: input, shape index: {}]   ;;  %s1978_s2 = inlined_call_operand.vmem [shape: bf16[32,32], index: 2, kind: input, shape index: {}]   ;;  %s1979_s3 = inlined_call_operand.vmem [shape: f32[1,32], index: 3, kind: input, shape index: {}]   ;;  %s1980_s4 = inlined_call_operand.vmem [shape: bf16[32,128], index: 4, kind: input, shape index: {}]   ;;  %s1981_s5 = inlined_call_operand.vmem [shape: f32[1,128], index: 5, kind: input, shape index: {}]   ;;  %s1982_s6 = inlined_call_operand.vmem [shape: bf16[128,32], index: 6, kind: input, shape index: {}]   ;;  %s1983_s7 = inlined_call_operand.vmem [shape: f32[1,32], index: 7, kind: input, shape index: {}]   ;;  %s1984_s8 = inlined_call_operand.vmem [shape: f32[1,32], index: 8, kind: input, shape index: {}]   ;;  %s1985_s9 = inlined_call_operand.vmem [shape: f32[1,32], index: 9, kind: input, shape index: {}]   ;;  %s1986_s10 = inlined_call_operand.vmem [shape: f32[1,32], index: 10, kind: input, shape index: {}]   ;;  %s1987_s11 = inlined_call_operand.vmem [shape: f32[1,32], index: 11, kind: input, shape index: {}]   ;;  %s1988_s12 = inlined_call_operand.hbm [shape: f32[2,8,32], index: 12, kind: output, shape index: {}]  }
   0x1   :  { %1989 = sst [smem:[#allocation5_spill]] %s1976_s0 }
   0x2   :  { %1990 = sst [smem:[#allocation6_spill]] %s1977_s1 }
   0x3   :  { %1991 = sst [smem:[#allocation7_spill]] %s1978_s2 }
   0x4   :  { %17 = vsyncpa [#allocation3], 0 }
   0x5   :  { %19 = vsyncpa [#allocation3 + $0x1], 0  ;;  %s1716_s21 = smov 0   ;;  %s1718_s22 = smov 0  }
   0x6   :  { %s1720_s23 = smov 0   ;;  %s1722_s24 = smov 0  }
   0x7 LB: > { %s1737_s25 = sadd.s32 4294967295, %s1632_s24   ;;  %s1313_s26 = sadd.s32 4294967294, %s1632_s24   ;;  %s1632_s24 = sphi %s1722_s24, %s2000_s24   ;;  %s1628_s23 = sphi %s1720_s23, %s1999_s23   ;;  %s1624_s22 = sphi %s1718_s22, %s1998_s22   ;;  %s1620_s21 = sphi %s1716_s21, %s1997_s21  }
   0x8   : > { %s1741_s27 = sadd.s32 1, %s1632_s24   ;;  %s289_s28 = sadd.s32 1, %s1628_s23 }
   0x9   : > { %s286_s29 = ssub.s32 %s1632_s24, %s1741_s27  ;;  %p299_p0 = scmp.ne.s32.totalorder %s1628_s23, %s1624_s22 }
   0xa   : > { %p287_p1 = scmp.eq.s32.totalorder %s286_s29, 0  ;;  %p300_p2 = scmp.eq.s32.totalorder %s1737_s25, 1 }
   0xb   : > { %p305_p3 = scmp.ne.s32.totalorder %s1624_s22, %s1620_s21  ;;  %p306_p4 = scmp.eq.s32.totalorder %s1313_s26, 1 }
   0xc   : > { %s1752_s30 = scalar_select %p287_p1, %s1628_s23, %s289_s28  }
   0xd   : > { %p1754_p5 = por %p300_p2, %p299_p0  ;;  %p1758_p6 = por %p306_p4, %p305_p3 }
   0xe   : > { %p1316_p7 = scmp.ge.s32.totalorder %s1632_s24, 1  ;;  %p364_p8 = scmp.lt.s32.totalorder %s1632_s24, 3 }
  0x10   : > { %p365_p9 = pnand %p1316_p7, %p364_p8 }
  0x11   : > { %s1994_s1 = sld [smem:[#allocation6_spill]] (!%p365_p9)  ;;  %v1634_v1 = vmov (!%p365_p9), 0.0   ;;  %vm1635_vm0 = vmmov (!%p365_p9), 0   ;;  %p405_p10 = scmp.lt.s32.totalorder (!%p365_p9), %s1737_s25, 1  ;;  %vm428_vm1 = vcmask (!%p365_p9), 261120   ;;  %vm476_vm2 = vcmask (!%p365_p9), 64512  }
  0x12   : > { %368 = sbr.rel (%p365_p9) target bundleno = 2576 (0xa10), region = 68  ;;  %1389 = vmatprep.subr.bf16.mxu0 (!%p365_p9), %v1634_v1  ;;  %1409 = vmatprep.subr.bf16.mxu1 (!%p365_p9), %v1634_v1  ;;  %s1995_s0 = sld [smem:[#allocation5_spill]] (!%p365_p9)  ;;  %vm540_vm3 = vcmask (!%p365_p9), 1043456   ;;  %vm927_vm4 = vcmask (!%p365_p9), 130048   ;;  %vm929_vm5 = vcmask (!%p365_p9), 195584  }
  0x13   : > { %1393 = vmatprep.mubr.msk.bf16.mxu0 (!%p365_p9), %vm1635_vm0, %v1634_v1  ;;  %1411 = vmatprep.mubr.msk.bf16.mxu1 (!%p365_p9), %vm1635_vm0, %v1634_v1  ;;  %s1636_s15 = smov (!%p365_p9), 120   ;;  %s1637_s16 = smov (!%p365_p9), 96  }
  0x14   : > { %s1638_s17 = smov (!%p365_p9), 80   ;;  %s1639_s18 = smov (!%p365_p9), 88  }
  0x15   : > { %s1642_s26 = smov (!%p365_p9), 104   ;;  %s1643_s28 = smov (!%p365_p9), 56  }
  0x16   : > { %s1996_s2 = sld [smem:[#allocation7_spill]] (!%p365_p9) }
  0x17   : > { %v1536_v0 = vld [vmem:[%s1994_s1] sm:$0xff] (!%p365_p9)   ;;  %v1537_v2 = vld [vmem:[%s1994_s1 + $0x8] sm:$0xff] (!%p365_p9)  }
  0x18   : > { %1390 = vmatpush3.bf16.msra.mxu0 (!%p365_p9), %v1536_v0 }
  0x19   : > { %1391 = vmatprep.subr.bf16.mxu0 %v1634_v1  ;;  %s406_s19 = scalar_select %p405_p10, %s1737_s25, 1 }
  0x1b   : > { %s1318_s20 = sshll.u32 %s406_s19, 2  ;;  %s1640_s19 = smov 72  }
  0x1c   : > { %1392 = vmatpush3.bf16.msra.mxu0 %v1537_v2  ;;  %s408_s29 = scalar_lea.vmem %s1995_s0, %s1318_s20  ;;  %s1641_s20 = smov 112  }
  0x1d   : > { %1397 = vmatprep.subr.bf16.mxu0 %v1634_v1  ;;  %v1783_v3 = vld [vmem:[%s408_s29] sm:$0xf]  ;;  %s1644_s29 = smov 64  }
  0x1f   : > { %1394 = vmatmul.mubr.msk.bf16.vlgmr.msra.gmra.mrb[0].mxu0 %vm428_vm1, %v1783_v3 }
  0x20   : > { %1399 = vmatprep.mubr.msk.bf16.mxu0 %vm1635_vm0, %v1634_v1 }
  0xf2   : > { %v466_v4 = vpop.f32.mrb[0].mxu0 }
  0xf3   : > { %v1789_v5 = vpack.c.bf16 %v466_v4, %v466_v4  ;;  %v1395_v6 = vpop.f32.mrb[1].mxu0 }
  0xf4   : > { %v469_v7 = vpop.f32.mrb[2].mxu0 }
  0xf5   : > { %584 = vrot.lane.b32.xlu1 %v1789_v5, %s1636_s15  ;;  %474 = vrot.lane.b32.xlu0 %v1789_v5, %s1637_s16  ;;  %v1396_v8 = vpop.f32.mrb[3].mxu0  ;;  %s1645_s15 = smov 40   ;;  %s1646_s16 = smov 48  }
  0xf9   : > { %696 = vrot.lane.b32.xlu1 %v1789_v5, %s1638_s17  ;;  %586 = vrot.lane.b32.xlu0 %v1789_v5, %s1639_s18  ;;  %s1647_s17 = smov 8   ;;  %s402_s18 = sand.u32 1, %s1624_s22  }
  0xfd   : > { %806 = vrot.lane.b32.xlu1 %v1789_v5, %s1640_s19  ;;  %694 = vrot.lane.b32.xlu0 %v1789_v5, %s1641_s20  ;;  %s1317_s19 = sshll.u32 %s402_s18, 3  ;;  %s1241_s20 = scalar_lea.sflag [#allocation3], %s402_s18 }
 0x101   : > { %804 = vrot.lane.b32.xlu0 %v1789_v5, %s1642_s26 }
 0x167   : > { %v475_v9 = vpop.permute.xlu0 %474  ;;  %v585_v11 = vpop.permute.xlu1 %584 }
 0x168   : > { %v481_v10 = vsel %vm476_vm2, %v475_v9, 0 }
 0x169   : > { %1398 = vmatpush3.bf16.xpose.msra.mxu0 %v481_v10 }
 0x16a   : > { %1403 = vmatprep.subr.bf16.mxu0 %v1634_v1 }
 0x16b   : > { %v587_v12 = vpop.permute.xlu0 %586  ;;  %v697_v14 = vpop.permute.xlu1 %696 }
 0x16c   : > { %v592_v13 = vsel %vm476_vm2, %v587_v12, 0  ;;  %v702_v15 = vsel %vm476_vm2, %v697_v14, 0 }
 0x16d   : > { %1410 = vmatpush3.bf16.xpose.msra.mxu1 %v592_v13 }
 0x16e   : > { %1421 = vmatprep.subr.bf16.mxu1 %v1634_v1 }
 0x16f   : > { %v807_v16 = vpop.permute.xlu1 %806  ;;  %v695_v17 = vpop.permute.xlu0 %694 }
 0x170   : > { %1400 = vmatmul.mubr.msk.bf16.vlgmr.msra.gmra.mrb[4].mxu0 %vm476_vm2, %v1789_v5  ;;  %v812_v18 = vsel %vm476_vm2, %v807_v16, 0 }
 0x171   : > { %1405 = vmatprep.mubr.msk.bf16.mxu0 %vm1635_vm0, %v1634_v1 }
 0x173   : > { %v805_v19 = vpop.permute.xlu0 %804 }
 0x174   : > { %1412 = vmatmul.mubr.msk.bf16.vlgmr.msra.gmra.mrb[0].mxu1 %vm476_vm2, %v585_v11 }
 0x175   : > { %1422 = vmatpush3.bf16.xpose.msra.mxu1 %v702_v15  ;;  %1423 = vmatprep.mubr.msk.bf16.mxu1 %vm1635_vm0, %v1634_v1 }
 0x176   : > { %1433 = vmatprep.subr.bf16.mxu1 %v1634_v1 }
 0x17c   : > { %1424 = vmatmul.mubr.msk.bf16.vlgmr.msra.gmra.mrb[4].mxu1 %vm476_vm2, %v695_v17 }
 0x17d   : > { %1434 = vmatpush3.bf16.xpose.msra.mxu1 %v812_v18  ;;  %1435 = vmatprep.mubr.msk.bf16.mxu1 %vm1635_vm0, %v1634_v1 }
 0x17e   : > { %1445 = vmatprep.subr.bf16.mxu1 %v1634_v1 }
 0x184   : > { %1436 = vmatmul.mubr.msk.bf16.vlgmr.msra.gmra.mrb[8].mxu1 %vm476_vm2, %v805_v19 }
 0x185   : > { %1449 = vmatprep.mubr.msk.bf16.mxu1 %vm1635_vm0, %v1634_v1 }
 0x243   : > { %v517_v20 = vpop.f32.mrb[4].mxu0 }
 0x244   : > { %v1401_v21 = vpop.f32.mrb[5].mxu0  ;;  %v523_v22 = vsel %vm476_vm2, %v517_v20, -inf }
 0x245   : > { %524 = vmax.xlane.f32.xlu1 %v523_v22  ;;  %v520_v23 = vpop.f32.mrb[6].mxu0 }
 0x246   : > { %v1402_v24 = vpop.f32.mrb[7].mxu0 }
 0x247   : > { %v628_v25 = vpop.f32.mrb[0].mxu1 }
 0x248   : > { %v1413_v26 = vpop.f32.mrb[1].mxu1  ;;  %v634_v27 = vsel %vm476_vm2, %v628_v25, -inf }
 0x249   : > { %635 = vmax.xlane.f32.xlu0 %v634_v27  ;;  %v631_v28 = vpop.f32.mrb[2].mxu1 }
 0x24a   : > { %v1414_v29 = vpop.f32.mrb[3].mxu1 }
 0x24f   : > { %v738_v30 = vpop.f32.mrb[4].mxu1 }
 0x250   : > { %v1425_v31 = vpop.f32.mrb[5].mxu1  ;;  %v744_v32 = vsel %vm476_vm2, %v738_v30, -inf }
 0x251   : > { %745 = vmax.xlane.f32.xlu0 %v744_v32  ;;  %v741_v33 = vpop.f32.mrb[6].mxu1  ;;  %v1539_v31 = vld [vmem:[%s1996_s2 + $0x8] sm:$0xff]  }
 0x252   : > { %v1426_v34 = vpop.f32.mrb[7].mxu1 }
 0x257   : > { %v848_v35 = vpop.f32.mrb[8].mxu1 }
 0x258   : > { %v1437_v36 = vpop.f32.mrb[9].mxu1  ;;  %v854_v37 = vsel %vm476_vm2, %v848_v35, -inf }
 0x259   : > { %v851_v38 = vpop.f32.mrb[10].mxu1  ;;  %855 = vmax.xlane.f32.xlu1 %v854_v37 }
 0x25a   : > { %v1438_v39 = vpop.f32.mrb[11].mxu1 }
 0x2d2   : > { %v525_v40 = vpop.xlane.xlu1 %524 }
 0x2d3   : > { %v526_v41 = vsub.f32 %v517_v20, %v525_v40 }
 0x2d5   : > { %v527_v42 = vmul.f32 1.442695, %v526_v41 }
 0x2d6   : > { %v636_v43 = vpop.xlane.xlu0 %635 }
 0x2d7   : > { %1550 = vpow2.f32 %v527_v42  ;;  %v637_v44 = vsub.f32 %v628_v25, %v636_v43 }
 0x2d9   : > { %v638_v45 = vmul.f32 1.442695, %v637_v44 }
 0x2db   : > { %1552 = vpow2.f32 %v638_v45 }
 0x2de   : > { %v746_v46 = vpop.xlane.xlu0 %745 }
 0x2df   : > { %v747_v47 = vsub.f32 %v738_v30, %v746_v46  ;;  %v1538_v30 = vld [vmem:[%s1996_s2] sm:$0xff]  }
 0x2e0   : > { %1446 = vmatpush3.bf16.msra.mxu1 %v1538_v30 }
 0x2e1   : > { %v1551_v48 = vpop.eup %1550  ;;  %v748_v49 = vmul.f32 1.442695, %v747_v47  ;;  %1447 = vmatprep.subr.bf16.mxu1 %v1634_v1  ;;  %v1330_v47 = vld [vmem:[%s1979_s3] ss:$0 sm:$0xff] }
 0x2e2   : > { %v529_v50 = vsel %vm476_vm2, %v1551_v48, 0.0 }
 0x2e3   : > { %1554 = vpow2.f32 %v748_v49  ;;  %530 = vadd.xlane.f32.xlu0 %v529_v50 }
 0x2e4   : > { %1448 = vmatpush3.bf16.msra.mxu1 %v1539_v31 }
 0x2e5   : > { %v1553_v51 = vpop.eup %1552  ;;  %1461 = vmatprep.subr.bf16.mxu1 %v1634_v1 }
 0x2e6   : > { %v640_v52 = vsel %vm476_vm2, %v1553_v51, 0.0  ;;  %v856_v55 = vpop.xlane.xlu1 %855 }
 0x2e7   : > { %641 = vadd.xlane.f32.xlu1 %v640_v52  ;;  %v857_v56 = vsub.f32 %v848_v35, %v856_v55 }
 0x2e9   : > { %v858_v57 = vmul.f32 1.442695, %v857_v56 }
 0x2eb   : > { %1556 = vpow2.f32 %v858_v57 }
 0x2ed   : > { %v1555_v53 = vpop.eup %1554 }
 0x2ee   : > { %v750_v54 = vsel %vm476_vm2, %v1555_v53, 0.0 }
 0x2ef   : > { %751 = vadd.xlane.f32.xlu0 %v750_v54 }
 0x2f5   : > { %v1557_v58 = vpop.eup %1556 }
 0x2f6   : > { %v860_v59 = vsel %vm476_vm2, %v1557_v58, 0.0 }
 0x2f8   : > { %646 = vrot.lane.b32.xlu1 %v1789_v5, %s1643_s28  ;;  %s1648_s28 = smov 16  }
 0x305   : > { %535 = vrot.lane.b32.xlu0 %v1789_v5, %s1644_s29  ;;  %s1649_s29 = smov 24  }
 0x309   : > { %866 = vrot.lane.b32.xlu0 %v1789_v5, %s1645_s15  ;;  %s1352_s15 = sshll.u32 %s1737_s25, 7  ;;  %s1650_s25 = smov [#allocation2]  }
 0x30a   : > { %s1933_s2 = scalar_lea.hbm %s1988_s12, %s1352_s15 }
 0x31c   : > { %861 = vadd.xlane.f32.xlu1 %v860_v59 }
 0x32d   : > { %756 = vrot.lane.b32.xlu1 %v1789_v5, %s1646_s16  ;;  %s404_s16 = scalar_lea.vmem [#allocation2], %s1317_s19  ;;  %s1574_s19 = sshll.u32 %s1650_s25, 4  ;;  %s1575_s19 = int_to_ptr.vmem [resolvable:$false] %s1574_s19 }
 0x370   : > { %v531_v60 = vpop.xlane.xlu0 %530 }
 0x371   : > { %1558 = vrcp.f32 %v531_v60 }
 0x374   : > { %v642_v61 = vpop.xlane.xlu1 %641 }
 0x375   : > { %1560 = vrcp.f32 %v642_v61  ;;  %v1541_v61 = vld [vmem:[%s1980_s4 + $0x8] sm:$0xff]  }
 0x378   : > { %v647_v6 = vpop.permute.xlu1 %646 }
 0x379   : > { %v652_v9 = vsel %vm540_vm3, %v647_v6, 0  ;;  %v1547_v6 = vld [vmem:[%s1982_s6 + $0x28] sm:$0xff]  }
 0x37b   : > { %v1559_v62 = vpop.eup %1558 }
 0x37c   : > { %v752_v63 = vpop.xlane.xlu0 %751  ;;  %v533_v0 = vmul.f32 %v1559_v62, %v1551_v48  ;;  %v411_v48 = vunpack.c.l.bf16 %v1783_v3  ;;  %v1540_v3 = vld [vmem:[%s1980_s4] sm:$0xff]  }
 0x37d   : > { %1562 = vrcp.f32 %v752_v63  ;;  %v1542_v62 = vld [vmem:[%s1982_s6] sm:$0xff]   ;;  %v1543_v63 = vld [vmem:[%s1982_s6 + $0x8] sm:$0xff]  }
 0x37e   : > { %v534_v7 = vpack.c.bf16 %v533_v0, %v533_v0  ;;  %v1544_v0 = vld [vmem:[%s1982_s6 + $0x10] sm:$0xff]  }
 0x37f   : > { %v1561_v8 = vpop.eup %1560 }
 0x380   : > { %v536_v2 = vpop.permute.xlu0 %535  ;;  %v644_v5 = vmul.f32 %v1561_v8, %v1553_v51 }
 0x381   : > { %v542_v4 = vsel %vm540_vm3, %v536_v2, 0  ;;  %v1545_v2 = vld [vmem:[%s1982_s6 + $0x18] sm:$0xff]  }
 0x382   : > { %1404 = vmatpush3.bf16.msra.mxu0 %v542_v4  ;;  %v645_v10 = vpack.c.bf16 %v644_v5, %v644_v5  ;;  %v1546_v4 = vld [vmem:[%s1982_s6 + $0x20] sm:$0xff]  }
 0x383   : > { %1415 = vmatprep.subr.bf16.mxu0 %v1634_v1 }
 0x384   : > { %v867_v16 = vpop.permute.xlu0 %866 }
 0x385   : > { %1406 = vmatmul.mubr.msk.bf16.vlgmr.msra.gmra.mrb[8].mxu0 %vm476_vm2, %v534_v7  ;;  %v872_v18 = vsel %vm540_vm3, %v867_v16, 0  ;;  %v1548_v16 = vld [vmem:[%s1982_s6 + $0x30] sm:$0xff]  }
 0x386   : > { %1416 = vmatpush3.bf16.msra.mxu0 %v652_v9  ;;  %1417 = vmatprep.mubr.msk.bf16.mxu0 %vm1635_vm0, %v1634_v1 }
 0x387   : > { %1427 = vmatprep.subr.bf16.mxu0 %v1634_v1  ;;  %v1563_v11 = vpop.eup %1562 }
 0x388   : > { %v754_v13 = vmul.f32 %v1563_v11, %v1555_v53 }
 0x38a   : > { %v755_v17 = vpack.c.bf16 %v754_v13, %v754_v13 }
 0x38d   : > { %1418 = vmatmul.mubr.msk.bf16.vlgmr.msra.gmra.mrb[12].mxu0 %vm476_vm2, %v645_v10  ;;  %v1334_v10 = vld [vmem:[%s1984_s8] ss:$0 sm:$0xff] }
 0x38e   : > { %1429 = vmatprep.mubr.msk.bf16.mxu0 %vm1635_vm0, %v1634_v1 }
 0x3a9   : > { %v862_v12 = vpop.xlane.xlu1 %861 }
 0x3aa   : > { %1564 = vrcp.f32 %v862_v12  ;;  %v1335_v12 = vld [vmem:[%s1985_s9] ss:$0 sm:$0xff] }
 0x3ad   : > { %v757_v14 = vpop.permute.xlu1 %756 }
 0x3ae   : > { %v762_v15 = vsel %vm540_vm3, %v757_v14, 0 }
 0x3af   : > { %1428 = vmatpush3.bf16.msra.mxu0 %v762_v15 }
 0x3b0   : > { %1439 = vmatprep.subr.bf16.mxu0 %v1634_v1 }
 0x3b2   : > { %1430 = vmatmul.mubr.msk.bf16.vlgmr.msra.gmra.mrb[16].mxu0 %vm476_vm2, %v755_v17  ;;  %v1549_v17 = vld [vmem:[%s1982_s6 + $0x38] sm:$0xff]  }
 0x3b3   : > { %1440 = vmatpush3.bf16.msra.mxu0 %v872_v18  ;;  %1441 = vmatprep.mubr.msk.bf16.mxu0 %vm1635_vm0, %v1634_v1  ;;  %v1336_v18 = vld [vmem:[%s1981_s5] ss:$0 sm:$0xff] }
 0x3b4   : > { %v1565_v19 = vpop.eup %1564  ;;  %1453 = vmatprep.subr.bf16.mxu0 %v1634_v1 }
 0x3b5   : > { %v864_v20 = vmul.f32 %v1565_v19, %v1557_v58 }
 0x3b7   : > { %v865_v21 = vpack.c.bf16 %v864_v20, %v864_v20 }
 0x3ba   : > { %1442 = vmatmul.mubr.msk.bf16.vlgmr.msra.gmra.mrb[20].mxu0 %vm476_vm2, %v865_v21 }
 0x3bb   : > { %1457 = vmatprep.mubr.msk.bf16.mxu0 %vm1635_vm0, %v1634_v1  ;;  %1454 = vmatpush3.bf16.msra.mxu0 %v1540_v3 }
 0x3bc   : > { %1455 = vmatprep.subr.bf16.mxu0 %v1634_v1 }
 0x3bf   : > { %1456 = vmatpush3.bf16.msra.mxu0 %v1541_v61 }
 0x458   : > { %v578_v22 = vpop.f32.mrb[8].mxu0 }
 0x459   : > { %v1407_v23 = vpop.f32.mrb[9].mxu0 }
 0x45a   : > { %v581_v24 = vpop.f32.mrb[10].mxu0 }
 0x45b   : > { %v1408_v25 = vpop.f32.mrb[11].mxu0 }
 0x460   : > { %v688_v26 = vpop.f32.mrb[12].mxu0 }
 0x461   : > { %915 = vrot.lane.b32.xlu1 %v688_v26, %s1647_s17  ;;  %v1419_v27 = vpop.f32.mrb[13].mxu0  ;;  %s1254_s17 = sshll.u32 %s404_s16, 4  ;;  %s1935_s17 = int_to_ptr.vmem [resolvable:$true] %s1254_s17 }
 0x462   : > { %v691_v28 = vpop.f32.mrb[14].mxu0  ;;  %s1570_s26 = scalar_lea.vmem %s1935_s17, 128  ;;  %p1577_p0 = scmp.lt.s32.totalorder %s1935_s17, %s1575_s19 }
 0x463   : > { %v1420_v29 = vpop.f32.mrb[15].mxu0  ;;  %p1571_p11 = scmp.ne.s32.totalorder %s1935_s17, %s1570_s26 }
 0x465   : > { %p1572_p12 = pnand %p1571_p11, %p1754_p5 }
 0x467   : > { %p1573_p13 = pneg %p1572_p12 }
 0x485   : > { %v798_v32 = vpop.f32.mrb[16].mxu0 }
 0x486   : > { %919 = vrot.lane.b32.xlu0 %v798_v32, %s1648_s28  ;;  %v1431_v33 = vpop.f32.mrb[17].mxu0  ;;  %s1576_s28 = scalar_lea.vmem %s1575_s19, 256 }
 0x487   : > { %v801_v34 = vpop.f32.mrb[18].mxu0  ;;  %p1578_p1 = scmp.lt.s32.totalorder %s1576_s28, %s1570_s26 }
 0x488   : > { %v1432_v35 = vpop.f32.mrb[19].mxu0 }
 0x489   : > { %p1579_p2 = por %p1578_p1, %p1577_p0 }
 0x48b   : > { %p1580_p3 = pnand %p1579_p2, %p1573_p13 }
 0x48d   : > { %v908_v36 = vpop.f32.mrb[20].mxu0 }
 0x48e   : > { %923 = vrot.lane.b32.xlu1 %v908_v36, %s1649_s29  ;;  %v1443_v37 = vpop.f32.mrb[21].mxu0 }
 0x48f   : > { %v911_v38 = vpop.f32.mrb[22].mxu0 }
 0x490   : > { %v1444_v39 = vpop.f32.mrb[23].mxu0 }
 0x4d3   : > { %v916_v40 = vpop.permute.xlu1 %915 }
 0x4d4   : > { %v926_v42 = vsel %vm476_vm2, %v578_v22, %v916_v40 }
 0x4f8   : > { %v920_v41 = vpop.permute.xlu0 %919 }
 0x4f9   : > { %v928_v43 = vsel %vm927_vm4, %v926_v42, %v920_v41  ;;  %v1349_v42 = vld [vmem:[%s1986_s10] ss:$0 sm:$0xff] }
 0x500   : > { %v924_v44 = vpop.permute.xlu1 %923 }
 0x501   : > { %v930_v45 = vsel %vm929_vm5, %v928_v43, %v924_v44  ;;  %v1350_v44 = vld [vmem:[%s1987_s11] ss:$0 sm:$0xff] }
 0x502   : > { %v931_v46 = vpack.c.bf16 %v930_v45, %v930_v45 }
 0x504   : > { %1450 = vmatmul.mubr.msk.bf16.vlgmr.msra.gmra.mrb[12].mxu1 %vm428_vm1, %v931_v46 }
 0x505   : > { %1477 = vmatprep.mubr.msk.bf16.mxu1 %vm1635_vm0, %v1634_v1  ;;  %1462 = vmatpush3.bf16.msra.mxu1 %v1542_v62 }
 0x506   : > { %1463 = vmatprep.subr.bf16.mxu1 %v1634_v1 }
 0x509   : > { %1464 = vmatpush3.bf16.msra.mxu1 %v1543_v63 }
 0x50a   : > { %1465 = vmatprep.subr.bf16.mxu1 %v1634_v1 }
 0x50d   : > { %1466 = vmatpush3.bf16.msra.mxu1 %v1544_v0 }
 0x50e   : > { %1467 = vmatprep.subr.bf16.mxu1 %v1634_v1 }
 0x511   : > { %1468 = vmatpush3.bf16.msra.mxu1 %v1545_v2 }
 0x512   : > { %1469 = vmatprep.subr.bf16.mxu1 %v1634_v1 }
 0x515   : > { %1470 = vmatpush3.bf16.msra.mxu1 %v1546_v4 }
 0x516   : > { %1471 = vmatprep.subr.bf16.mxu1 %v1634_v1 }
 0x519   : > { %1472 = vmatpush3.bf16.msra.mxu1 %v1547_v6 }
 0x51a   : > { %1473 = vmatprep.subr.bf16.mxu1 %v1634_v1 }
 0x51d   : > { %1474 = vmatpush3.bf16.msra.mxu1 %v1548_v16 }
 0x51e   : > { %1475 = vmatprep.subr.bf16.mxu1 %v1634_v1  ;;  %v1340_v1 = vld [vmem:[%s1983_s7] ss:$0 sm:$0xff] }
 0x521   : > { %1476 = vmatpush3.bf16.msra.mxu1 %v1549_v17 }
 0x5d7   : > { %v992_v49 = vpop.f32.mrb[12].mxu1 }
 0x5d8   : > { %v993_v50 = vadd.f32 %v1330_v47, %v992_v49  ;;  %v1451_v51 = vpop.f32.mrb[13].mxu1 }
 0x5d9   : > { %v995_v52 = vpop.f32.mrb[14].mxu1 }
 0x5da   : > { %v1452_v53 = vpop.f32.mrb[15].mxu1  ;;  %v998_v54 = vadd.f32 %v993_v50, %v411_v48 }
 0x5dc   : > { %v1001_v55 = vsel %vm428_vm1, %v998_v54, 0.0 }
 0x5dd   : > { %1002 = vadd.xlane.f32.xlu0 %v1001_v55 }
 0x66a   : > { %v1003_v56 = vpop.xlane.xlu0 %1002 }
 0x66b   : > { %v1005_v57 = vmul.f32 0.03125, %v1003_v56 }
 0x66d   : > { %v1006_v58 = vsub.f32 %v998_v54, %v1005_v57 }
 0x66f   : > { %v1007_v59 = vmul.f32 %v1006_v58, %v1006_v58 }
 0x671   : > { %v1008_v60 = vsel %vm428_vm1, %v1007_v59, 0.0 }
 0x672   : > { %1009 = vadd.xlane.f32.xlu1 %v1008_v60 }
 0x6ff   : > { %v1010_v7 = vpop.xlane.xlu1 %1009 }
 0x700   : > { %v1011_v8 = vmul.f32 0.03125, %v1010_v7 }
 0x702   : > { %v1012_v9 = vadd.f32 1e-05, %v1011_v8 }
 0x704   : > { %1566 = vrsqrt.f32 %v1012_v9 }
 0x70e   : > { %v1567_v5 = vpop.eup %1566 }
 0x70f   : > { %v1014_v11 = vmul.f32 %v1567_v5, %v1006_v58 }
 0x711   : > { %v1021_v13 = vmul.f32 %v1334_v10, %v1014_v11 }
 0x713   : > { %v1028_v14 = vadd.f32 %v1335_v12, %v1021_v13 }
 0x715   : > { %v1029_v15 = vpack.c.bf16 %v1028_v14, %v1028_v14 }
 0x717   : > { %1458 = vmatmul.mubr.msk.bf16.vlgmr.msra.gmra.mrb[24].mxu0 %vm428_vm1, %v1029_v15 }
 0x7ea   : > { %v1090_v19 = vpop.f32.mrb[24].mxu0 }
 0x7eb   : > { %v1091_v20 = vadd.f32 %v1336_v18, %v1090_v19  ;;  %v1459_v21 = vpop.f32.mrb[25].mxu0 }
 0x7ec   : > { %v1093_v22 = vpop.f32.mrb[26].mxu0 }
 0x7ed   : > { %v1096_v23 = vmax.f32 %v1091_v20, 0.0  ;;  %v1460_v24 = vpop.f32.mrb[27].mxu0 }
 0x7ef   : > { %v1097_v25 = vpack.c.bf16 %v1096_v23, %v1096_v23 }
 0x7f1   : > { %1478 = vmatmul.mubr.bf16.vlgmr.msra.gmra.mrb[16].mxu1 %v1097_v25 }
 0x8c4   : > { %v1203_v26 = vpop.f32.mrb[16].mxu1 }
 0x8c5   : > { %v1204_v27 = vadd.f32 %v1340_v1, %v1203_v26  ;;  %v1479_v28 = vpop.f32.mrb[17].mxu1 }
 0x8c6   : > { %v1206_v29 = vpop.f32.mrb[18].mxu1 }
 0x8c7   : > { %v1480_v30 = vpop.f32.mrb[19].mxu1  ;;  %v1209_v31 = vadd.f32 %v1204_v27, %v1028_v14 }
 0x8c9   : > { %v1212_v32 = vsel %vm428_vm1, %v1209_v31, 0.0 }
 0x8ca   : > { %1213 = vadd.xlane.f32.xlu0 %v1212_v32 }
 0x957   : > { %v1214_v33 = vpop.xlane.xlu0 %1213 }
 0x958   : > { %v1215_v34 = vmul.f32 0.03125, %v1214_v33 }
 0x95a   : > { %v1216_v35 = vsub.f32 %v1209_v31, %v1215_v34 }
 0x95c   : > { %v1217_v36 = vmul.f32 %v1216_v35, %v1216_v35 }
 0x95e   : > { %v1218_v37 = vsel %vm428_vm1, %v1217_v36, 0.0 }
 0x95f   : > { %1219 = vadd.xlane.f32.xlu0 %v1218_v37 }
 0x9ec   : > { %v1220_v38 = vpop.xlane.xlu0 %1219 }
 0x9ed   : > { %v1221_v39 = vmul.f32 0.03125, %v1220_v38 }
 0x9ef   : > { %v1222_v40 = vadd.f32 1e-05, %v1221_v39 }
 0x9f1   : > { %1568 = vrsqrt.f32 %v1222_v40 }
 0x9fb   : > { %v1569_v41 = vpop.eup %1568 }
 0x9fc   : > { %v1224_v43 = vmul.f32 %v1569_v41, %v1216_v35 }
 0x9fe   : > { %v1231_v45 = vmul.f32 %v1349_v42, %v1224_v43 }
 0xa00   : > { %v1238_v46 = vadd.f32 %v1350_v44, %v1231_v45 }
 0xa02   : > { %1239 = vst.msk [vmem:[%s404_s16] sm:$0xff] %vm428_vm1, %v1238_v46 }
 0xa03   : > { %1583 = shalt.err (!%p1580_p3)
}
 0xa04   : > { %s1584_s0 = scalar_lea.hbm %s1933_s2, 128  ;;  %s1588_s29 = scalar_lea.hbm %s1988_s12, 256 }
 0xa05   : > { %p1585_p4 = scmp.ne.s32.totalorder %s1933_s2, %s1584_s0  ;;  %p1589_p9 = scmp.lt.u32.totalorder %s1933_s2, %s1988_s12 }
 0xa06   : > { %p1590_p10 = scmp.lt.u32.totalorder %s1588_s29, %s1584_s0  ;;  %p1592_p12 = scmp.lt.u32.totalorder %s1584_s0, %s1933_s2 }
 0xa07   : > { %p1586_p7 = pnand %p1585_p4, %p1754_p5 }
 0xa08   : > { %p1591_p11 = por %p1590_p10, %p1589_p9 }
 0xa09   : > { %p1587_p8 = pneg %p1586_p7 }
 0xa0a   : > { %p1593_p13 = por %p1592_p12, %p1591_p11 }
 0xa0c   : > { %p1594_p0 = pnand %p1593_p13, %p1587_p8 }
 0xa0e   : > { %1597 = shalt.err (!%p1594_p0)
}
 0xa0f   : > { %1481 = dma.vmem_to_hbm [thread:$0]  (%p1754_p5), %s1935_s17, 128, %s1933_s2, %s1241_s20  }
 0xa10 PF: > { %p1487_p1 = scmp.ge.s32.totalorder %s1632_s24, 2  ;;  %s1266_s26 = sand.u32 1, %s1620_s21  }
 0xa11   : > { %s1267_s25 = scalar_lea.sflag [#allocation3], %s1266_s26 }
 0xa12   : > { %p1484_p2 = pnand %p1487_p1, %p1758_p6 }
 0xa14   : > { %1615 = dma.done.wait (!%p1484_p2), %s1267_s25, 128  }
 0xa15   : > { %1617 = vsyncadd (!%p1484_p2), %s1267_s25, 4294967168  ;;  %p22_p3 = scmp.ge.s32.totalorder %s1741_s27, 4   ;;  %s1997_s21 = smov %s1624_s22 }
 0xa16   : > { %s1998_s22 = smov %s1628_s23  ;;  %s1999_s23 = smov %s1752_s30 }
 0xa17   : > { %s2000_s24 = smov %s1741_s27  ;;  %24 = sbr.rel (!%p22_p3) target bundleno = 7 (0x7), region = 103 }
 0xa1e   :  { %1272 = vsyncpa [#allocation3], 1 }
 0xa1f   :  { %1274 = vsyncpa [#allocation3 + $0x1], 1 }

</bundles_post_ra>
